<compile_context>
chip_gen: v6e
topology: v6e:2x2x1
jax: 0.10.0
libtpu: 0.0.40
codegen_flags: <defaults>
</compile_context>

<pallas_src>
import jax
import jax.numpy as jnp
from jax.experimental import pallas as pl
from jax.experimental.pallas import tpu as pltpu


def dot_product_attention_kernel(q_ref, v_ref, wb_ref, o_ref):
    q = q_ref[...]                       # (B, Lq, H)
    v = v_ref[...]                       # (B, Lv, H)
    B, Lq, H = q.shape

    # score[b] = q[b] @ v[b].T  -> (B, Lq, Lv)   (no 1/sqrt(H) scaling, per the module)
    score = jnp.einsum('bqh,bkh->bqk', q, v,
                       preferred_element_type=jnp.float32)

    # row-wise softmax over Lv (== PyTorch's view(-1, Lv) softmax dim=1)
    m = jnp.max(score, axis=-1, keepdims=True)
    e = jnp.exp(score - m)
    # exact reciprocal keeps 1e-5 parity; approx=True would use the free EUP slot.
    attn = e * pl.reciprocal(jnp.sum(e, axis=-1, keepdims=True), approx=False)

    # context[b] = attn[b] @ v[b]  -> (B, Lq, H)
    context = jnp.einsum('bqk,bkh->bqh', attn, v,
                         preferred_element_type=jnp.float32)

    # Fused epilogue: fold (B, Lq) rows into one (B*Lq, 2H) slab (lane concat -> XLU)
    # and run a SINGLE K=2H MXU dot against the full weight, plus the packed bias row.
    x2 = jnp.concatenate(
        [q.reshape(B * Lq, H), context.reshape(B * Lq, H)], axis=-1)   # (B*Lq, 2H)
    w = wb_ref[:2 * H, :]                 # (2H, H) weight
    b = wb_ref[2 * H:2 * H + 1, :]        # (1, H)  bias row packed at init
    y = jnp.dot(x2, w, preferred_element_type=jnp.float32) + b         # (B*Lq, H)

    # exact (erf-based) GELU, matching torch.nn.functional.gelu default
    out = 0.5 * y * (1.0 + jax.lax.erf(y * 0.7071067811865476))
    o_ref[...] = out.astype(o_ref.dtype)


def dot_product_attention(query, value, weight_bias):
    """query: (B, Lq, H), value: (B, Lv, H), weight_bias: (2H+1, H) = [W (in,out); b]."""
    B, Lq, H = query.shape

    out2d = pl.pallas_call(
        dot_product_attention_kernel,
        out_shape=jax.ShapeDtypeStruct((B * Lq, H), query.dtype),
        # No grid: single invocation, no software-pipeline machinery. Whole arrays
        # land in VMEM as one block each (3 input DMAs total).
        in_specs=[
            pl.BlockSpec(memory_space=pltpu.MemorySpace.VMEM),   # query
            pl.BlockSpec(memory_space=pltpu.MemorySpace.VMEM),   # value
            pl.BlockSpec(memory_space=pltpu.MemorySpace.VMEM),   # weight+bias
        ],
        out_specs=pl.BlockSpec(memory_space=pltpu.MemorySpace.VMEM),
    )(query, value, weight_bias)
    return out2d.reshape(B, Lq, H)


def reference(query, value, weight, bias):
    score = jnp.einsum('bqh,bkh->bqk', query, value)
    attn = jax.nn.softmax(score, axis=-1)
    context = jnp.einsum('bqk,bkh->bqh', attn, value)
    emb = jnp.concatenate([query, context], axis=-1)
    y = emb @ weight + bias
    return jax.nn.gelu(y, approximate=False)


if __name__ == "__main__":
    # Shapes implied by the forward: batch=2, seq(Lq)=8, value seq(Lv)=8,
    # hidden_dim=32, bidirectional=False -> Linear(2*32, 32).
    B, Lq, Lv, H = 2, 8, 8, 32

    key = jax.random.PRNGKey(0)
    kq, kv, kw, kb = jax.random.split(key, 4)
    query = jax.random.normal(kq, (B, Lq, H), dtype=jnp.float32)
    value = jax.random.normal(kv, (B, Lv, H), dtype=jnp.float32)

    # Deterministic Linear(2H, H) params (weight stored pre-transposed: (in, out)).
    bound = 1.0 / jnp.sqrt(2.0 * H)
    weight = jax.random.uniform(kw, (2 * H, H), jnp.float32, -bound, bound)
    bias = jax.random.uniform(kb, (H,), jnp.float32, -bound, bound)

    # Pack the bias as the last row of the weight ONCE at parameter-init time
    # (one fewer HBM->VMEM DMA per kernel call).
    weight_bias = jnp.concatenate([weight, bias[None, :]], axis=0)     # (2H+1, H)

    out = dot_product_attention(query, value, weight_bias)
    out = jax.block_until_ready(out)

    ref = reference(query, value, weight, bias)
    assert out.shape == (B, Lq, H)
    assert jnp.allclose(out, ref, atol=1e-5, rtol=1e-5), "mismatch vs reference"

    print("KERNEL_OK")
</pallas_src>

<mosaic_0001>
module attributes {stable_mosaic.version = 11 : i64} {
  func.func @dot_product_attention_kernel(%arg0: memref<2x8x32xf32, #tpu.memory_space<vmem>>, %arg1: memref<2x8x32xf32, #tpu.memory_space<vmem>>, %arg2: memref<65x32xf32, #tpu.memory_space<vmem>>, %arg3: memref<16x32xf32, #tpu.memory_space<vmem>>) attributes {dimension_semantics = [], scalar_prefetch = 0 : i64, scratch_operands = 0 : i64, tpu.core_type = #tpu.core_type<tc>} {
    %c0 = arith.constant 0 : index
    %c0_0 = arith.constant 0 : index
    %c0_1 = arith.constant 0 : index
    %0 = vector.load %arg0[%c0, %c0_0, %c0_1] : memref<2x8x32xf32, #tpu.memory_space<vmem>>, vector<2x8x32xf32>
    %c0_2 = arith.constant 0 : index
    %c0_3 = arith.constant 0 : index
    %c0_4 = arith.constant 0 : index
    %1 = vector.load %arg1[%c0_2, %c0_3, %c0_4] : memref<2x8x32xf32, #tpu.memory_space<vmem>>, vector<2x8x32xf32>
    "tpu.trace_start"() <{level = 10 : i32, message = "bqh,bkh->bqk"}> : () -> ()
    %cst = arith.constant dense<0.000000e+00> : vector<2x8x8xf32>
    %2 = tpu.matmul %0, %1, %cst {dimension_numbers = #tpu.dot_dimension_numbers<[2], [2], [1], [1], [0, 0, 0, 1, 1, 1], [0], [0]>} : vector<2x8x32xf32>, vector<2x8x32xf32>, vector<2x8x8xf32> -> vector<2x8x8xf32>
    "tpu.trace_stop"() : () -> ()
    %cst_5 = arith.constant dense<0xFF800000> : vector<2x8xf32>
    %3 = vector.multi_reduction <maximumf>, %2, %cst_5 [2] : vector<2x8x8xf32> to vector<2x8xf32>
    %4 = vector.shape_cast %3 : vector<2x8xf32> to vector<2x8x1xf32>
    %5 = vector.broadcast %4 : vector<2x8x1xf32> to vector<2x8x8xf32>
    %6 = arith.subf %2, %5 : vector<2x8x8xf32>
    %7 = math.exp %6 : vector<2x8x8xf32>
    %cst_6 = arith.constant dense<0.000000e+00> : vector<2x8xf32>
    %8 = vector.multi_reduction <add>, %7, %cst_6 [2] : vector<2x8x8xf32> to vector<2x8xf32>
    %9 = vector.shape_cast %8 : vector<2x8xf32> to vector<2x8x1xf32>
    %10 = tpu.reciprocal %9 : vector<2x8x1xf32> -> vector<2x8x1xf32>
    %11 = vector.broadcast %10 : vector<2x8x1xf32> to vector<2x8x8xf32>
    %12 = arith.mulf %7, %11 : vector<2x8x8xf32>
    "tpu.trace_start"() <{level = 10 : i32, message = "bqk,bkh->bqh"}> : () -> ()
    %cst_7 = arith.constant dense<0.000000e+00> : vector<2x8x32xf32>
    %13 = tpu.matmul %12, %1, %cst_7 {dimension_numbers = #tpu.dot_dimension_numbers<[2], [1], [1], [2], [0, 0, 0, 1, 1, 2], [0], [0]>} : vector<2x8x8xf32>, vector<2x8x32xf32>, vector<2x8x32xf32> -> vector<2x8x32xf32>
    "tpu.trace_stop"() : () -> ()
    %14 = vector.shape_cast %0 : vector<2x8x32xf32> to vector<16x32xf32>
    %15 = vector.shape_cast %13 : vector<2x8x32xf32> to vector<16x32xf32>
    %16 = tpu.concatenate %14, %15 in 1 : vector<16x32xf32>, vector<16x32xf32> -> vector<16x64xf32>
    %c0_8 = arith.constant 0 : index
    %c0_9 = arith.constant 0 : index
    %17 = vector.load %arg2[%c0_8, %c0_9] : memref<65x32xf32, #tpu.memory_space<vmem>>, vector<64x32xf32>
    %c64 = arith.constant 64 : index
    %c0_10 = arith.constant 0 : index
    %18 = vector.load %arg2[%c64, %c0_10] : memref<65x32xf32, #tpu.memory_space<vmem>>, vector<1x32xf32>
    %cst_11 = arith.constant dense<0.000000e+00> : vector<16x32xf32>
    %19 = tpu.matmul %16, %17, %cst_11 {dimension_numbers = #tpu.dot_dimension_numbers<[1], [0], [0], [1], [0, 0, 1, 1], [], []>} : vector<16x64xf32>, vector<64x32xf32>, vector<16x32xf32> -> vector<16x32xf32>
    %20 = vector.broadcast %18 : vector<1x32xf32> to vector<16x32xf32>
    %21 = arith.addf %19, %20 : vector<16x32xf32>
    %cst_12 = arith.constant 5.000000e-01 : f32
    %22 = vector.broadcast %cst_12 : f32 to vector<16x32xf32>
    %23 = arith.mulf %22, %21 : vector<16x32xf32>
    %cst_13 = arith.constant 0.707106769 : f32
    %24 = vector.broadcast %cst_13 : f32 to vector<16x32xf32>
    %25 = arith.mulf %21, %24 : vector<16x32xf32>
    %26 = math.erf %25 : vector<16x32xf32>
    %cst_14 = arith.constant 1.000000e+00 : f32
    %27 = vector.broadcast %cst_14 : f32 to vector<16x32xf32>
    %28 = arith.addf %27, %26 : vector<16x32xf32>
    %29 = arith.mulf %23, %28 : vector<16x32xf32>
    %c0_15 = arith.constant 0 : index
    %c0_16 = arith.constant 0 : index
    %30 = vector.load %arg3[%c0_15, %c0_16] : memref<16x32xf32, #tpu.memory_space<vmem>>, vector<16x32xf32>
    tpu.vector_store %arg3[%c0_15, %c0_16], %29 {strides = array<i32>} : memref<16x32xf32, #tpu.memory_space<vmem>>, vector<16x32xf32>,
    return
  }
}

</mosaic_0001>

<bundles_post_ra>
// kernel: tpu_custom_call.1
= control target key start
LH: loop header
LB: loop body
LE: loop exit
PB: predicated region body
PF: predicated region fallthrough
CT: control target
= control target key end

     0   :  { %vm19_vm0 = vcmask 261120   ;;  %v580_v1 = vmov 0.0   ;;  %vm581_vm1 = vmmov 0   ;;  %s674_s0 = inlined_call_operand.vmem [shape: f32[2,8,32], index: 0, kind: input, shape index: {}]   ;;  %s675_s1 = inlined_call_operand.vmem [shape: f32[2,8,32], index: 1, kind: input, shape index: {}]   ;;  %s676_s2 = inlined_call_operand.vmem [shape: f32[65,32], index: 2, kind: input, shape index: {}]   ;;  %s677_s3 = inlined_call_operand.hbm [shape: f32[16,32], index: 3, kind: output, shape index: {}]  }
   0x1   :  { %v17_v0 = vld [vmem:[%s675_s1] sm:$0xff]  ;;  %501 = vmatprep.subr.mxu1 %v580_v1  ;;  %503 = vmatprep.mubr.msk.f32.mxu1 %vm581_vm1, %v580_v1 }
   0x2   :  { %8 = vsyncpa [#allocation3], 0  ;;  %502 = vmatpush3.xpose.msk.msra.mxu1 %vm19_vm0, %v17_v0  ;;  %v614_v2 = vld [vmem:[%s674_s0] sm:$0xff]  ;;  %v18_v3 = vld [vmem:[%s675_s1 + $0x8] sm:$0xff]  ;;  %vm172_vm2 = vcmask 64512   ;;  %s582_s7 = smov 32  }
   0x3   :  { %506 = vmatprep.subr.mxu1 %v580_v1  ;;  %v626_v4 = vld [vmem:[%s674_s0 + $0x8] sm:$0xff]  ;;  %v358_v27 = vld [vmem:[%s676_s2 + $0x38] sm:$0xff]  ;;  %v357_v28 = vld [vmem:[%s676_s2 + $0x30] sm:$0xff]  ;;  %vm364_vm3 = vcmask 523264   ;;  %s583_s10 = smov [#allocation2]  }
   0x4   :  { %521 = vmatprep.subr.mxu0 %v358_v27  ;;  %v356_v29 = vld [vmem:[%s676_s2 + $0x28] sm:$0xff]  ;;  %v355_v30 = vld [vmem:[%s676_s2 + $0x20] sm:$0xff]  ;;  %v354_v31 = vld [vmem:[%s676_s2 + $0x18] sm:$0xff]  ;;  %s463_s11 = sshll.u32 %s583_s10, 4  ;;  %s464_s11 = int_to_ptr.vmem [resolvable:$true] %s463_s11 }
   0x5   :  { %504 = vmatmul.mubr.msk.f32.vlgmr.msra.gmra.mxu1 %vm19_vm0, %v614_v2  ;;  %522 = vmatpush3.msra.mxu0 %v358_v27  ;;  %v353_v32 = vld [vmem:[%s676_s2 + $0x10] sm:$0xff]  ;;  %v352_v33 = vld [vmem:[%s676_s2 + $0x8] sm:$0xff]  ;;  %v351_v34 = vld [vmem:[%s676_s2] sm:$0xff]  ;;  %p563_p1 = scmp.lt.s32.totalorder %s464_s11, %s464_s11 }
   0x6   :  { %507 = vmatpush3.xpose.msk.msra.mxu1 %vm19_vm0, %v18_v3  ;;  %508 = vmatprep.mubr.msk.f32.mxu1 %vm581_vm1, %v580_v1  ;;  %v480_v43 = vld [vmem:[%s676_s2 + $0x40] ss:$0 sm:$0xff]  ;;  %s558_s2 = scalar_lea.vmem %s464_s11, 256 }
   0x7   :  { %511 = vmatprep.subr.mxu1 %v580_v1  ;;  %523 = vmatprep.subr.mxu0 %v357_v28  ;;  %p559_p0 = scmp.ne.s32.totalorder %s464_s11, %s558_s2  ;;  %p564_p2 = scmp.lt.s32.totalorder %s558_s2, %s558_s2 }
   0x8   :  { %524 = vmatpush3.msra.mxu0 %v357_v28 }
   0x9   :  { %509 = vmatmul.mubr.msk.f32.vlgmr.msra.gmra.mxu1 %vm19_vm0, %v626_v4  ;;  %525 = vmatprep.subr.mxu0 %v356_v29  ;;  %p565_p3 = por %p564_p2, %p563_p1 }
   0xa   :  { %512 = vmatpush3.msra.mxu1 %v17_v0  ;;  %513 = vmatprep.mubr.msk.f32.mxu1 %vm581_vm1, %v580_v1 }
   0xb   :  { %516 = vmatprep.subr.mxu1 %v580_v1  ;;  %526 = vmatpush3.msra.mxu0 %v356_v29  ;;  %p566_p4 = pnand %p565_p3, %p559_p0 }
   0xc   :  { %527 = vmatprep.subr.mxu0 %v355_v30 }
   0xd   :  { %528 = vmatpush3.msra.mxu0 %v355_v30 }
   0xe   :  { %529 = vmatprep.subr.mxu0 %v354_v31 }
   0xf   :  { %530 = vmatpush3.msra.mxu0 %v354_v31 }
  0x10   :  { %531 = vmatprep.subr.mxu0 %v353_v32 }
  0x11   :  { %532 = vmatpush3.msra.mxu0 %v353_v32 }
  0x12   :  { %533 = vmatprep.subr.mxu0 %v352_v33 }
  0x13   :  { %534 = vmatpush3.msra.mxu0 %v352_v33 }
  0x14   :  { %535 = vmatprep.subr.mxu0 %v351_v34 }
  0x15   :  { %536 = vmatpush3.msra.mxu0 %v351_v34 }
  0xc5   :  { %v92_v5 = vpop.f32.mrf.mxu1 }
  0xc6   :  { %v173_v6 = vsel %vm172_vm2, %v92_v5, -inf }
  0xc7   :  { %174 = vmax.xlane.f32.xlu0 %v173_v6  ;;  %v505_v7 = vpop.f32.mrf.mxu1 }
  0xc9   :  { %v168_v8 = vpop.f32.mrf.mxu1 }
  0xca   :  { %v176_v9 = vsel %vm172_vm2, %v168_v8, -inf }
  0xcb   :  { %177 = vmax.xlane.f32.xlu0 %v176_v9  ;;  %v510_v10 = vpop.f32.mrf.mxu1 }
 0x150   :  { %v175_v11 = vpop.xlane.xlu0 %174 }
 0x151   :  { %v179_v12 = vsub.f32 %v92_v5, %v175_v11 }
 0x153   :  { %v181_v13 = vmul.f32 1.442695, %v179_v12 }
 0x154   :  { %v178_v14 = vpop.xlane.xlu0 %177 }
 0x155   :  { %546 = vpow2.f32 %v181_v13  ;;  %v180_v15 = vsub.f32 %v168_v8, %v178_v14 }
 0x157   :  { %v183_v16 = vmul.f32 1.442695, %v180_v15 }
 0x159   :  { %548 = vpow2.f32 %v183_v16 }
 0x162   :  { %v547_v17 = vpop.eup %546 }
 0x163   :  { %v185_v18 = vsel %vm172_vm2, %v547_v17, 0.0 }
 0x164   :  { %186 = vadd.xlane.f32.xlu1 %v185_v18 }
 0x166   :  { %v549_v19 = vpop.eup %548 }
 0x167   :  { %v188_v20 = vsel %vm172_vm2, %v549_v19, 0.0 }
 0x168   :  { %189 = vadd.xlane.f32.xlu1 %v188_v20 }
 0x1ed   :  { %v187_v21 = vpop.xlane.xlu1 %186 }
 0x1ee   :  { %550 = vrcp.f32 %v187_v21 }
 0x1f1   :  { %v190_v22 = vpop.xlane.xlu1 %189 }
 0x1f2   :  { %552 = vrcp.f32 %v190_v22 }
 0x1fb   :  { %v551_v23 = vpop.eup %550 }
 0x1fc   :  { %v193_v24 = vmul.f32 %v551_v23, %v547_v17 }
 0x1fe   :  { %514 = vmatmul.mubr.msk.f32.vlgmr.msra.gmra.mxu1 %vm172_vm2, %v193_v24 }
 0x1ff   :  { %v553_v25 = vpop.eup %552  ;;  %517 = vmatpush3.msra.mxu1 %v18_v3  ;;  %518 = vmatprep.mubr.msk.f32.mxu1 %vm581_vm1, %v580_v1 }
 0x200   :  { %v194_v26 = vmul.f32 %v553_v25, %v549_v19 }
 0x202   :  { %519 = vmatmul.mubr.msk.f32.vlgmr.msra.gmra.mxu1 %vm172_vm2, %v194_v26 }
 0x2be   :  { %v264_v35 = vpop.f32.mrf.mxu1 }
 0x2bf   :  { %343 = vrot.lane.b32.xlu0 %v264_v35, %s582_s7 }
 0x2c0   :  { %v515_v36 = vpop.f32.mrf.mxu1 }
 0x2c2   :  { %v337_v37 = vpop.f32.mrf.mxu1 }
 0x2c3   :  { %345 = vrot.lane.b32.xlu1 %v337_v37, %s582_s7 }
 0x2c4   :  { %v520_v38 = vpop.f32.mrf.mxu1 }
 0x331   :  { %v344_v39 = vpop.permute.xlu0 %343 }
 0x332   :  { %v349_v40 = vsel %vm19_vm0, %v614_v2, %v344_v39 }
 0x333   :  { %537 = vmatprep.mubr.msk.f32.mxu0 %vm364_vm3, %v349_v40 }
 0x335   :  { %v346_v41 = vpop.permute.xlu1 %345 }
 0x336   :  { %v350_v42 = vsel %vm19_vm0, %v626_v4, %v346_v41 }
 0x337   :  { %538 = vmatmul.mubr.msk.f32.vlgmr.msra.gmra.mxu0 %vm364_vm3, %v350_v42 }
 0x3f7   :  { %v539_v44 = vpop.f32.mrf.mxu0 }
 0x3f8   :  { %v443_v45 = vadd.f32 %v539_v44, %v480_v43 }
 0x3f9   :  { %v437_v46 = vpop.f32.mrf.mxu0 }
 0x3fa   :  { %v449_v47 = vmul.f32 0.70710677, %v443_v45  ;;  %v438_v48 = vadd.f32 %v480_v43, %v437_v46  ;;  %v447_v51 = vmul.f32 0.5, %v443_v45 }
 0x3fc   :  { %554 = verf.f32 %v449_v47  ;;  %v448_v49 = vmul.f32 0.70710677, %v438_v48  ;;  %v446_v55 = vmul.f32 0.5, %v438_v48 }
 0x3fe   :  { %556 = verf.f32 %v448_v49 }
 0x409   :  { %v555_v50 = vpop.eup %554 }
 0x40a   :  { %v453_v52 = vadd.f32 1.0, %v555_v50 }
 0x40b   :  { %v557_v53 = vpop.eup %556 }
 0x40c   :  { %v455_v54 = vmul.f32 %v453_v52, %v447_v51  ;;  %v452_v56 = vadd.f32 1.0, %v557_v53 }
 0x40e   :  { %457 = vst.msk [vmem:[#allocation2 + $0x8] sm:$0xff] %vm19_vm0, %v455_v54  ;;  %v454_v57 = vmul.f32 %v452_v56, %v446_v55 }
 0x410   :  { %456 = vst.msk [vmem:[#allocation2] sm:$0xff] %vm19_vm0, %v454_v57 }
 0x411   :  { %569 = shalt.err (!%p566_p4)
}
 0x412   :  { %s584_s12 = smov 128   ;;  %s585_s13 = smov 8  }
 0x413   :  { %469 = dma.vmem_to_hbm [thread:$0]  %s464_s11, 256, %s677_s3, [#allocation3], %s584_s12, %s584_s12, %s585_s13  }
 0x414   :  { %578 = dma.done.wait [#allocation3], 256  }
 0x415   :  { %579 = vsyncadd [#allocation3], 4294967040 }
 0x416   :  { %473 = vsyncpa [#allocation3], 1 }

</bundles_post_ra>
